<compile_context>
chip_gen: v7x
topology: tpu7x:2x2x1
jax: 0.10.0
libtpu: 0.0.40
codegen_flags: <defaults>
</compile_context>

<pallas_src>
import jax
import jax.numpy as jnp
from jax.experimental import pallas as pl
from jax.experimental.pallas import tpu as pltpu


def _mlp_head_kernel(x_ref, w_ref, b_ref, o_ref):
    # x_ref: (TN, C, HW)   TN images, channels, flattened spatial (lane axis)
    # w_ref: (C, NC_pad)   transposed fc weight, pre-scaled by 1/(H*W)
    # b_ref: (1, NC_pad)   bias
    # o_ref: (TN, NC_pad)  logits
    x = x_ref[...].astype(jnp.float32)                   # f32 accumulation
    pooled = jnp.sum(x, axis=2)                          # (TN, C) spatial sum
    pooled = pooled.astype(w_ref.dtype)                  # narrow matmul inputs
    y = jnp.dot(pooled, w_ref[...],
                preferred_element_type=jnp.float32)      # (TN, NC_pad), f32 acc
    o_ref[...] = (y + b_ref[...].astype(jnp.float32)).astype(o_ref.dtype)


def _choose_tn(N, C, HW, NC_pad, x_isize, w_isize, o_isize):
    """Pick the batch-tile size TN (largest that fits a conservative VMEM budget)."""
    if N < 8:
        return N                      # full-extent block, no padding needed
    n8 = pl.cdiv(N, 8) * 8
    budget = 40 * 1024 * 1024         # leaves headroom on v7x's 64 MiB VMEM
    for tn in (32, 16, 8):
        if tn > n8:
            continue
        x_blk = tn * C * HW * x_isize
        w_blk = C * NC_pad * w_isize
        o_blk = tn * NC_pad * o_isize
        b_blk = NC_pad * 4
        if 2 * (x_blk + w_blk + o_blk + b_blk) <= budget:
            return tn
    return 8                          # fallback (very large feature maps)


def mlp_head_forward(x, weight, bias):
    """MlpHead.forward.

    x      : (N, C, H, W)      feature map (NCHW, PyTorch convention)
    weight : (num_classes, C)  nn.Linear weight
    bias   : (num_classes,)    nn.Linear bias
    returns: (N, num_classes)  logits (in x.dtype)
    """
    N, C, H, W = x.shape
    NC = weight.shape[0]
    assert weight.shape == (NC, C) and bias.shape == (NC,)
    HW = H * W

    # Free, contiguous reshape: flatten spatial onto the lane axis.
    x_flat = x.reshape(N, C, HW)

    # One-time tiny parameter transforms: transpose, fold in 1/(H*W),
    # keep the weight in its native dtype for a narrow MXU matmul.
    inv_hw = 1.0 / float(HW)
    w_t = (jnp.transpose(weight).astype(jnp.float32) * inv_hw).astype(weight.dtype)
    b2 = bias.reshape(1, NC)

    # Lane-dense class padding (uniform, unmasked store path).
    nc_pad = pl.cdiv(NC, 128) * 128
    if nc_pad != NC:
        w_t = jnp.pad(w_t, ((0, 0), (0, nc_pad - NC)))
        b2 = jnp.pad(b2, ((0, 0), (0, nc_pad - NC)))

    out_dtype = x.dtype
    tn = _choose_tn(N, C, HW, nc_pad,
                    x.dtype.itemsize, w_t.dtype.itemsize,
                    jnp.dtype(out_dtype).itemsize)

    n_pad = pl.cdiv(N, tn) * tn
    if n_pad != N:
        x_flat = jnp.pad(x_flat, ((0, n_pad - N), (0, 0), (0, 0)))

    grid = (n_pad // tn,)

    out = pl.pallas_call(
        _mlp_head_kernel,
        out_shape=jax.ShapeDtypeStruct((n_pad, nc_pad), out_dtype),
        grid_spec=pltpu.PrefetchScalarGridSpec(
            num_scalar_prefetch=0,
            grid=grid,
            in_specs=[
                pl.BlockSpec((tn, C, HW), lambda i: (i, 0, 0)),
                # Weight/bias block indices are constant across the grid, so
                # they are DMA'd once and stay resident in VMEM.
                pl.BlockSpec((C, nc_pad), lambda i: (0, 0)),
                pl.BlockSpec((1, nc_pad), lambda i: (0, 0)),
            ],
            out_specs=pl.BlockSpec((tn, nc_pad), lambda i: (i, 0)),
        ),
        compiler_params=pltpu.CompilerParams(
            dimension_semantics=("parallel",),
            vmem_limit_bytes=48 * 1024 * 1024,
        ),
    )(x_flat, w_t, b2)

    return out[:N, :NC]


def _reference(x, weight, bias):
    """Pure-JAX reference mirroring the PyTorch module."""
    pooled = jnp.mean(x, axis=(2, 3))            # (N, C)
    return pooled @ weight.T + bias              # (N, num_classes)


if __name__ == "__main__":
    key = jax.random.PRNGKey(0)
    kx1, kx2, kw1, kb1, kw2, kb2 = jax.random.split(key, 6)

    # Config 1: small batch (full-batch block, grid=(1,)), classes pad 32->128.
    N1, C1, H1, W1, NC1 = 2, 4, 16, 16, 32
    x1 = jax.random.normal(kx1, (N1, C1, H1, W1), dtype=jnp.float32)
    w1 = 0.1 * jax.random.normal(kw1, (NC1, C1), dtype=jnp.float32)
    b1 = 0.1 * jax.random.normal(kb1, (NC1,), dtype=jnp.float32)

    # Config 2: batch > 8 (exercises batch tiling/padding), odd spatial (7x7),
    # classes pad 160->256.
    N2, C2, H2, W2, NC2 = 10, 4, 7, 7, 160
    x2 = jax.random.normal(kx2, (N2, C2, H2, W2), dtype=jnp.float32)
    w2 = 0.1 * jax.random.normal(kw2, (NC2, C2), dtype=jnp.float32)
    b2 = 0.1 * jax.random.normal(kb2, (NC2,), dtype=jnp.float32)

    for (x, w, b, nc) in [(x1, w1, b1, NC1), (x2, w2, b2, NC2)]:
        out = jax.block_until_ready(mlp_head_forward(x, w, b))
        ref = _reference(x, w, b)
        assert out.shape == (x.shape[0], nc)
        assert jnp.allclose(out, ref, atol=1e-4, rtol=1e-5), \
            f"mismatch vs reference (num_classes={nc})"

    print("KERNEL_OK")
</pallas_src>

<mosaic_0001>
module attributes {stable_mosaic.version = 11 : i64} {
  func.func @_mlp_head_kernel(%arg0: i32, %arg1: memref<2x4x256xf32, #tpu.memory_space<vmem>>, %arg2: memref<4x128xf32, #tpu.memory_space<vmem>>, %arg3: memref<1x128xf32, #tpu.memory_space<vmem>>, %arg4: memref<2x128xf32, #tpu.memory_space<vmem>>) attributes {dimension_semantics = [#tpu.dimension_semantics<parallel>], iteration_bounds = array<i64: 1>, scalar_prefetch = 0 : i64, scratch_operands = 0 : i64, tpu.core_type = #tpu.core_type<tc>, window_params = [{transform_indices = @transform_0, window_bounds = array<i64: 2, 4, 256>}, {pipeline_mode = #tpu.pipeline_mode<synchronous>, transform_indices = @transform_1, window_bounds = array<i64: 4, 128>}, {pipeline_mode = #tpu.pipeline_mode<synchronous>, transform_indices = @transform_2, window_bounds = array<i64: 1, 128>}, {transform_indices = @transform_3, window_bounds = array<i64: 2, 128>}]} {
    %c0 = arith.constant 0 : index
    %c0_0 = arith.constant 0 : index
    %c0_1 = arith.constant 0 : index
    %0 = vector.load %arg1[%c0, %c0_0, %c0_1] : memref<2x4x256xf32, #tpu.memory_space<vmem>>, vector<2x4x256xf32>
    %cst = arith.constant dense<0.000000e+00> : vector<2x4xf32>
    %1 = vector.multi_reduction <add>, %0, %cst [2] : vector<2x4x256xf32> to vector<2x4xf32>
    %c0_2 = arith.constant 0 : index
    %c0_3 = arith.constant 0 : index
    %2 = vector.load %arg2[%c0_2, %c0_3] : memref<4x128xf32, #tpu.memory_space<vmem>>, vector<4x128xf32>
    %cst_4 = arith.constant dense<0.000000e+00> : vector<2x128xf32>
    %3 = tpu.matmul %1, %2, %cst_4 {dimension_numbers = #tpu.dot_dimension_numbers<[1], [0], [0], [1], [0, 0, 1, 1], [], []>} : vector<2x4xf32>, vector<4x128xf32>, vector<2x128xf32> -> vector<2x128xf32>
    %c0_5 = arith.constant 0 : index
    %c0_6 = arith.constant 0 : index
    %4 = vector.load %arg3[%c0_5, %c0_6] : memref<1x128xf32, #tpu.memory_space<vmem>>, vector<1x128xf32>
    %5 = vector.broadcast %4 : vector<1x128xf32> to vector<2x128xf32>
    %6 = arith.addf %3, %5 : vector<2x128xf32>
    %c0_7 = arith.constant 0 : index
    %c0_8 = arith.constant 0 : index
    %7 = vector.load %arg4[%c0_7, %c0_8] : memref<2x128xf32, #tpu.memory_space<vmem>>, vector<2x128xf32>
    tpu.vector_store %arg4[%c0_7, %c0_8], %6 {strides = array<i32>} : memref<2x128xf32, #tpu.memory_space<vmem>>, vector<2x128xf32>,
    return
  }
  func.func @transform_0(%arg0: i32) -> (i32, i32, i32) {
    %c0_i32 = arith.constant 0 : i32
    %c0_i32_0 = arith.constant 0 : i32
    %c0_i32_1 = arith.constant 0 : i32
    return %arg0, %c0_i32, %c0_i32_0 : i32, i32, i32
  }
  func.func @transform_1(%arg0: i32) -> (i32, i32) {
    %c0_i32 = arith.constant 0 : i32
    %c0_i32_0 = arith.constant 0 : i32
    %c0_i32_1 = arith.constant 0 : i32
    return %c0_i32, %c0_i32_0 : i32, i32
  }
  func.func @transform_2(%arg0: i32) -> (i32, i32) {
    %c0_i32 = arith.constant 0 : i32
    %c0_i32_0 = arith.constant 0 : i32
    %c0_i32_1 = arith.constant 0 : i32
    return %c0_i32, %c0_i32_0 : i32, i32
  }
  func.func @transform_3(%arg0: i32) -> (i32, i32) {
    %c0_i32 = arith.constant 0 : i32
    %c0_i32_0 = arith.constant 0 : i32
    return %arg0, %c0_i32 : i32, i32
  }
}

</mosaic_0001>

<bundles_post_ra>
// kernel: tpu_custom_call.1
= control target key start
LH: loop header
LB: loop body
LE: loop exit
PB: predicated region body
PF: predicated region fallthrough
CT: control target
= control target key end

     0   :  { %8 = vsyncpa [#allocation3], 0  ;;  %s337_s0 = inlined_call_operand.hbm [shape: f32[2,4,256], index: 0, kind: input, shape index: {}]   ;;  %s338_s1 = inlined_call_operand.hbm [shape: f32[4,128], index: 1, kind: input, shape index: {}]   ;;  %s339_s2 = inlined_call_operand.vmem [shape: f32[1,128], index: 2, kind: input, shape index: {}]   ;;  %s340_s3 = inlined_call_operand.hbm [shape: f32[2,128], index: 3, kind: output, shape index: {}]  }
   0x1   :  { %9 = vsyncpa [#allocation6], 0 }
   0x2   :  { %10 = vsyncpa [#allocation4], 0  ;;  %s266_s12 = smov [#allocation2]   ;;  %s194_s16 = scalar_lea.hbm %s337_s0, 256 }
   0x3   :  { %s16_s13 = sshll.u32 %s266_s12, 4  ;;  %p195_p0 = scmp.ne.s32.totalorder %s337_s0, %s194_s16  ;;  %s17_s13 = int_to_ptr.vmem [resolvable:$true] %s16_s13 }
   0x4   :  { %p198_p1 = scmp.lt.u32.totalorder %s194_s16, %s337_s0 }
   0x6   :  { %p200_p2 = pnand %p198_p1, %p195_p0 }
   0x8   :  { %203 = shalt.err (!%p200_p2)
}
   0x9   :  { %s204_s21 = scalar_lea.vmem %s17_s13, 256  ;;  %p209_p4 = scmp.lt.s32.totalorder %s17_s13, %s17_s13 }
   0xa   :  { %p205_p3 = scmp.ne.s32.totalorder %s17_s13, %s204_s21  ;;  %p210_p5 = scmp.lt.s32.totalorder %s204_s21, %s204_s21 }
   0xc   :  { %p211_p6 = por %p210_p5, %p209_p4 }
   0xe   :  { %p212_p7 = pnand %p211_p6, %p205_p3 }
  0x10   :  { %215 = shalt.err (!%p212_p7)
}
  0x11   :  { %s267_s22 = smov 128   ;;  %s268_s23 = smov 8  }
  0x12   :  { %22 = dma.hbm_to_vmem [thread:$0]  %s337_s0, 256, %s17_s13, [#allocation3], %s267_s22, %s267_s22, %s268_s23  }
  0x13   :  { %s269_s26 = smov [#allocation5]   ;;  %s216_s30 = scalar_lea.hbm %s338_s1, 64 }
  0x14   :  { %s29_s27 = sshll.u32 %s269_s26, 4  ;;  %p217_p8 = scmp.ne.s32.totalorder %s338_s1, %s216_s30  ;;  %s30_s27 = int_to_ptr.vmem [resolvable:$true] %s29_s27 }
  0x15   :  { %p220_p9 = scmp.lt.u32.totalorder %s216_s30, %s338_s1 }
  0x17   :  { %p222_p10 = pnand %p220_p9, %p217_p8 }
  0x19   :  { %225 = shalt.err (!%p222_p10)
}
  0x1a   :  { %s226_s8 = scalar_lea.vmem %s30_s27, 64  ;;  %p231_p12 = scmp.lt.s32.totalorder %s30_s27, %s30_s27 }
  0x1b   :  { %p227_p11 = scmp.ne.s32.totalorder %s30_s27, %s226_s8  ;;  %p232_p13 = scmp.lt.s32.totalorder %s226_s8, %s226_s8 }
  0x1d   :  { %p233_p0 = por %p232_p13, %p231_p12 }
  0x1f   :  { %p234_p1 = pnand %p233_p0, %p227_p11 }
  0x21   :  { %237 = shalt.err (!%p234_p1)
}
  0x22   :  { %32 = dma.hbm_to_vmem [thread:$0]  %s338_s1, 64, %s30_s27, [#allocation6]  }
  0x23   :  { %260 = dma.done.wait [#allocation3], 256  }
  0x24   :  { %261 = vsyncadd [#allocation3], 4294967040 }
  0x25   :  { %262 = dma.done.wait [#allocation6], 64  }
  0x26   :  { %263 = vsyncadd [#allocation6], 4294967232  ;;  %vm49_vm0 = vcmask 1043456   ;;  %v41_v0 = vld [vmem:[#allocation2] sm:$0xff]  ;;  %v42_v1 = vld [vmem:[#allocation2 + $0x8] sm:$0xff]  ;;  %v270_v11 = vmov 0.0   ;;  %v70_v12 = vlaneseq }
  0x27   :  { %v45_v2 = vcombine.high %v41_v0, %v41_v0  ;;  %v50_v3 = vsel %vm49_vm0, %v41_v0, 0.0  ;;  %v46_v4 = vcombine.high %v42_v1, %v42_v1  ;;  %v55_v6 = vsel %vm49_vm0, %v42_v1, 0.0  ;;  %v60_v10 = vld [vmem:[#allocation5] sm:$0xf]  ;;  %180 = vmatprep.subr.mxu0 %v270_v11  ;;  %v175_v21 = vld [vmem:[%s339_s2] ss:$0 sm:$0xff] }
  0x28   :  { %vm271_vm1 = vmmov 0   ;;  %181 = vmatpush3.msk.msra.mxu0 %vm49_vm0, %v60_v10  ;;  %v71_v13 = vand.u32 127, %v70_v12  ;;  %v73_v14 = vshrl.u32 %v70_v12, 7  ;;  %vm80_vm2 = vcmask 1041409   ;;  %s272_s11 = smov [#allocation7]  }
  0x29   :  { %v51_v5 = vsel %vm49_vm0, %v45_v2, 0.0  ;;  %v56_v7 = vsel %vm49_vm0, %v46_v4, 0.0  ;;  %182 = vmatprep.mubr.msk.f32.mxu0 %vm271_vm1, %v270_v11  ;;  %vm82_vm3 = vcmask 31744   ;;  %s165_s12 = sshll.u32 %s272_s11, 4  ;;  %s166_s12 = int_to_ptr.vmem [resolvable:$true] %s165_s12 }
  0x2a   :  { %v52_v8 = vadd.f32 %v51_v5, %v50_v3  ;;  %v57_v9 = vadd.f32 %v56_v7, %v55_v6  ;;  %v74_v16 = vsub.s32 %v71_v13, %v73_v14  ;;  %s238_s13 = scalar_lea.vmem %s166_s12, 32  ;;  %p243_p3 = scmp.lt.s32.totalorder %s166_s12, %s166_s12 }
  0x2b   :  { %p239_p2 = scmp.ne.s32.totalorder %s166_s12, %s238_s13  ;;  %p244_p4 = scmp.lt.s32.totalorder %s238_s13, %s238_s13 }
  0x2c   :  { %53 = vadd.xlane.f32.xlu0 %v52_v8 }
  0x2d   :  { %p245_p5 = por %p244_p4, %p243_p3 }
  0x2f   :  { %p246_p6 = pnand %p245_p5, %p239_p2 }
  0x30   :  { %58 = vadd.xlane.f32.xlu0 %v57_v9 }
  0xb9   :  { %v54_v15 = vpop.xlane.xlu0 %53 }
  0xba   :  { %v75_v18 = vrot.slane %v54_v15, %v74_v16 }
  0xbd   :  { %v59_v17 = vpop.xlane.xlu0 %58 }
  0xbe   :  { %v79_v19 = vrot.slane %v59_v17, %v74_v16 }
  0xc0   :  { %v81_v20 = vsel %vm80_vm2, %v79_v19, %v75_v18 }
  0xc1   :  { %183 = vmatmul.mubr.msk.f32.vlgmr.msra.gmra.mrb[0].mxu0 %vm82_vm3, %v81_v20 }
 0x194   :  { %v154_v22 = vpop.f32.mrb[0].mxu0 }
 0x195   :  { %v155_v23 = vadd.f32 %v175_v21, %v154_v22  ;;  %v184_v24 = vpop.f32.mrb[1].mxu0 }
 0x197   :  { %158 = vst [vmem:[#allocation7] sm:$0x3] %v155_v23 }
 0x198   :  { %249 = shalt.err (!%p246_p6)
}
 0x199   :  { %s250_s16 = scalar_lea.hbm %s340_s3, 32 }
 0x19a   :  { %p251_p7 = scmp.ne.s32.totalorder %s340_s3, %s250_s16  ;;  %p254_p8 = scmp.lt.u32.totalorder %s250_s16, %s340_s3 }
 0x19c   :  { %p256_p9 = pnand %p254_p8, %p251_p7 }
 0x19e   :  { %259 = shalt.err (!%p256_p9)
}
 0x19f   :  { %168 = dma.vmem_to_hbm [thread:$0]  %s166_s12, 32, %s340_s3, [#allocation4]  }
 0x1a0   :  { %264 = dma.done.wait [#allocation4], 32  }
 0x1a1   :  { %265 = vsyncadd [#allocation4], 4294967264 }
 0x1a2   :  { %172 = vsyncpa [#allocation3], 1 }
 0x1a3   :  { %173 = vsyncpa [#allocation6], 1 }
 0x1a4   :  { %174 = vsyncpa [#allocation4], 1 }

</bundles_post_ra>
